<compile_context>
chip_gen: v7x
topology: tpu7x:2x2x1
jax: 0.10.0
libtpu: 0.0.40
codegen_flags: <defaults>
</compile_context>

<pallas_src>
import functools

import jax
import jax.numpy as jnp
from jax.experimental import pallas as pl
from jax.experimental.pallas import tpu as pltpu

_BN_EPS = 1e-5


def _round_up(x, m):
    return (x + m - 1) // m * m


def fibinet_kernel(x_ref, waug_ref, se_w2_ref, mw1_ref, mb1_ref, mw2_ref,
                   mb2_ref, mw3_ref, mb3_ref, out_ref, y_ref,
                   *, num_fields, embedding_dim, senet_reduced):
    """One batch tile.  x_ref is (TB, F*E) in the natural input layout."""
    F, E, R = num_fields, embedding_dim, senet_reduced
    P = F * (F - 1) // 2
    FE, PE = F * E, P * E
    TB = x_ref.shape[0]
    f32 = jnp.float32

    # ---- One MXU pass: transpose + all pair projections + SENET layer 1 ----
    # xproj[m, b] = sum_k W_aug[m, k] * x[b, k]   (A @ B^T pattern)
    #   rows [0, FE)        : x^T  (identity block -> batch on lanes)
    #   rows [FE, FE+PE)    : W_p @ x_i^T for every pair p
    #   rows [FE+PE, ...+R) : SENET layer-1 pre-activation (mean fold included)
    xproj = jax.lax.dot_general(
        waug_ref[...], x_ref[...],
        dimension_numbers=(((1,), (1,)), ((), ())),
        preferred_element_type=f32)                       # (M_aug, TB)

    x_t = xproj[:FE]                                      # (FE, TB)
    proj = xproj[FE:FE + PE]                              # (PE, TB)
    a1 = jnp.maximum(xproj[FE + PE:FE + PE + R], 0.0)     # (R, TB)

    # ---- SENET layer 2 on the VPU (tiny): a2 = relu(W2 @ a1) -> (F, TB) ----
    w2 = se_w2_ref[...]                                   # (F, R)
    a2 = jnp.zeros((F, TB), f32)
    for r in range(R):
        a2 = a2 + w2[:, r:r + 1] * a1[r:r + 1, :]
    a2 = jnp.maximum(a2, 0.0)

    # ---- Build the shallow slab Y (2*P*E, TB) in VMEM scratch ----
    # rows [p*E, (p+1)*E)       : bilinear(x) pair p
    # rows [(P+p)*E, (P+p+1)*E) : bilinear(senet(x)) pair p = (a_i*a_j)*above
    pairs = [(i, j) for i in range(F) for j in range(i + 1, F)]
    for p, (i, j) in enumerate(pairs):
        y_x = proj[p * E:(p + 1) * E] * x_t[j * E:(j + 1) * E]   # (E, TB) dense
        y_ref[p * E:(p + 1) * E, :] = y_x
        scale = a2[i:i + 1, :] * a2[j:j + 1, :]                  # (1, TB)
        y_ref[(P + p) * E:(P + p + 1) * E, :] = y_x * scale

    # ---- MLP tail (BN eval-mode scale already folded into weights/biases) ----
    h1 = jnp.maximum(
        jnp.dot(mw1_ref[...], y_ref[...], preferred_element_type=f32)
        + mb1_ref[...], 0.0)                                     # (H1, TB)
    h2 = jnp.maximum(
        jnp.dot(mw2_ref[...], h1, preferred_element_type=f32)
        + mb2_ref[...], 0.0)                                     # (H2, TB)
    # Final (H2 -> 1) layer as a VPU/XLU reduction; result is lane-dense (1, TB).
    logit = jnp.sum(h2 * mw3_ref[...], axis=0, keepdims=True) + mb3_ref[...]
    out_ref[0] = jax.nn.sigmoid(logit)                           # (1, TB)


def make_params(key, num_fields, embedding_dim):
    """Deterministic parameters in the PyTorch (out_features, in_features) layout."""
    F, E = num_fields, embedding_dim
    R = max(1, F // 3)                           # SENET reduction_ratio=3
    P = F * (F - 1) // 2
    hidden = F * (F - 1) * E
    dims = [32, 16]
    ks = jax.random.split(key, 9)

    def lin_w(k, out_f, in_f):
        return (jax.random.normal(k, (out_f, in_f), jnp.float32)
                / jnp.sqrt(jnp.float32(in_f)))

    return dict(
        se_w1=lin_w(ks[0], R, F),                 # nn.Linear(F, R, bias=False).weight
        se_w2=lin_w(ks[1], F, R),                 # nn.Linear(R, F, bias=False).weight
        bw=(jax.random.normal(ks[2], (P, E, E), jnp.float32)
            / jnp.sqrt(jnp.float32(E))),          # per-pair nn.Linear(E, E).weight
        mw1=lin_w(ks[3], dims[0], hidden),
        mb1=0.01 * jax.random.normal(ks[4], (dims[0],), jnp.float32),
        mw2=lin_w(ks[5], dims[1], dims[0]),
        mb2=0.01 * jax.random.normal(ks[6], (dims[1],), jnp.float32),
        mw3=lin_w(ks[7], 1, dims[1]),
        mb3=0.01 * jax.random.normal(ks[8], (1,), jnp.float32),
    )


@functools.partial(jax.jit, static_argnames=("block_b",))
def fibinet_forward(x, params, block_b=8192):
    B, F, E = x.shape
    FE = F * E
    P = F * (F - 1) // 2
    R = params["se_w1"].shape[0]
    H1 = params["mw1"].shape[0]
    H2 = params["mw2"].shape[0]
    bn_scale = (1.0 + _BN_EPS) ** -0.5

    # --- batch tile: lane-dense multiple of 128, large for low per-step
    #     overhead, but capped so G >= 2 when B allows (keeps both v7x TCs busy).
    block_b = _round_up(block_b, 128)
    TB = min(block_b, _round_up(B, 128),
             max(128, _round_up((B + 1) // 2, 128)))
    Bp = _round_up(B, TB)
    G = Bp // TB

    xf = x.reshape(B, FE)                         # natural layout, no transpose
    if Bp != B:
        xf = jnp.pad(xf, ((0, Bp - B), (0, 0)))

    # --- pack weights (tiny, traced once per jit) ---
    pairs = [(i, j) for i in range(F) for j in range(i + 1, F)]
    w_big = jnp.zeros((P * E, FE), jnp.float32)   # block-diag-ish bilinear weights
    for p, (i, j) in enumerate(pairs):
        w_big = w_big.at[p * E:(p + 1) * E, i * E:(i + 1) * E].set(params["bw"][p])
    mean_mat = jnp.kron(jnp.eye(F, dtype=jnp.float32),
                        jnp.ones((1, E), jnp.float32) / E)        # (F, FE)
    w1m = params["se_w1"] @ mean_mat                              # (R, FE)
    m_aug = _round_up(FE + P * E + R, 8)
    w_aug = jnp.zeros((m_aug, FE), jnp.float32)
    w_aug = w_aug.at[:FE].set(jnp.eye(FE, dtype=jnp.float32))
    w_aug = w_aug.at[FE:FE + P * E].set(w_big)
    w_aug = w_aug.at[FE + P * E:FE + P * E + R].set(w1m)

    mw1s = params["mw1"] * bn_scale                               # BN folded
    mb1s = (params["mb1"] * bn_scale).reshape(H1, 1)
    mw2s = params["mw2"] * bn_scale
    mb2s = (params["mb2"] * bn_scale).reshape(H2, 1)
    mw3t = jnp.transpose(params["mw3"])                           # (H2, 1)
    mb3 = params["mb3"].reshape(1, 1)

    weights = (w_aug, params["se_w2"], mw1s, mb1s, mw2s, mb2s, mw3t, mb3)

    def _const_spec(a):
        return pl.BlockSpec(a.shape, lambda i, n=a.ndim: (0,) * n)

    kernel = functools.partial(fibinet_kernel, num_fields=F,
                               embedding_dim=E, senet_reduced=R)

    vmem_limit = int(min(100 * 2**20, 8 * 2**20 + 4 * TB * 1024))

    out = pl.pallas_call(
        kernel,
        out_shape=jax.ShapeDtypeStruct((G, 1, TB), jnp.float32),
        grid=(G,),
        in_specs=[pl.BlockSpec((TB, FE), lambda i: (i, 0))]       # x tile
                 + [_const_spec(w) for w in weights],             # resident weights
        out_specs=pl.BlockSpec((1, 1, TB), lambda i: (i, 0, 0)),  # lane-dense out
        scratch_shapes=[pltpu.VMEM((2 * P * E, TB), jnp.float32)],  # shallow slab Y
        compiler_params=pltpu.CompilerParams(
            dimension_semantics=("parallel",),                    # megacore / 2-TC
            vmem_limit_bytes=vmem_limit),
    )(xf, *weights)

    return out.reshape(Bp, 1)[:B]


def fibinet_reference(x, params):
    """Pure-JAX reference mirroring the PyTorch module (eval mode)."""
    B, F, E = x.shape
    bn_scale = (1.0 + _BN_EPS) ** -0.5
    z = jnp.mean(x, axis=-1)
    a1 = jax.nn.relu(z @ params["se_w1"].T)
    a2 = jax.nn.relu(a1 @ params["se_w2"].T)
    v = x * a2[:, :, None]
    pairs = [(i, j) for i in range(F) for j in range(i + 1, F)]

    def bilinear(emb):
        outs = [(emb[:, i, :] @ params["bw"][p].T) * emb[:, j, :]
                for p, (i, j) in enumerate(pairs)]
        return jnp.stack(outs, axis=1)                           # (B, P, E)

    shallow = jnp.concatenate([bilinear(x), bilinear(v)], axis=1).reshape(B, -1)
    h1 = jax.nn.relu((shallow @ params["mw1"].T + params["mb1"]) * bn_scale)
    h2 = jax.nn.relu((h1 @ params["mw2"].T + params["mb2"]) * bn_scale)
    logit = h2 @ params["mw3"].T + params["mb3"]
    return jax.nn.sigmoid(logit)


if __name__ == "__main__":
    # Small shapes consistent with the module: embedding_dim=16, num_fields=4
    # => input_dim = 64, x has shape (batch, num_fields, embedding_dim).
    B, F, E = 2, 4, 16

    key = jax.random.PRNGKey(0)
    kx, kp = jax.random.split(key)
    x = jax.random.normal(kx, (B, F, E), jnp.float32)
    params = make_params(kp, F, E)

    out = fibinet_forward(x, params)
    jax.block_until_ready(out)

    assert out.shape == (B, 1)
    assert bool(jnp.all(jnp.isfinite(out)))
    assert bool(jnp.all((out >= 0.0) & (out <= 1.0)))

    ref = fibinet_reference(x, params)
    max_err = float(jnp.max(jnp.abs(out - ref)))
    assert max_err < 2e-2, f"kernel/reference mismatch: {max_err}"

    print("KERNEL_OK")
</pallas_src>

<mosaic_0001>
module attributes {stable_mosaic.version = 11 : i64} {
  func.func @fibinet_kernel(%arg0: i32, %arg1: memref<128x64xf32, #tpu.memory_space<vmem>>, %arg2: memref<168x64xf32, #tpu.memory_space<vmem>>, %arg3: memref<4x1xf32, #tpu.memory_space<vmem>>, %arg4: memref<32x192xf32, #tpu.memory_space<vmem>>, %arg5: memref<32x1xf32, #tpu.memory_space<vmem>>, %arg6: memref<16x32xf32, #tpu.memory_space<vmem>>, %arg7: memref<16x1xf32, #tpu.memory_space<vmem>>, %arg8: memref<16x1xf32, #tpu.memory_space<vmem>>, %arg9: memref<1x1xf32, #tpu.memory_space<vmem>>, %arg10: memref<1x1x128xf32, #tpu.memory_space<vmem>>, %arg11: memref<192x128xf32, #tpu.memory_space<vmem>>) attributes {dimension_semantics = [#tpu.dimension_semantics<parallel>], iteration_bounds = array<i64: 1>, scalar_prefetch = 0 : i64, scratch_operands = 1 : i64, tpu.core_type = #tpu.core_type<tc>, window_params = [{transform_indices = @transform_0, window_bounds = array<i64: 128, 64>}, {pipeline_mode = #tpu.pipeline_mode<synchronous>, transform_indices = @transform_1, window_bounds = array<i64: 168, 64>}, {pipeline_mode = #tpu.pipeline_mode<synchronous>, transform_indices = @transform_2, window_bounds = array<i64: 4, 1>}, {pipeline_mode = #tpu.pipeline_mode<synchronous>, transform_indices = @transform_3, window_bounds = array<i64: 32, 192>}, {pipeline_mode = #tpu.pipeline_mode<synchronous>, transform_indices = @transform_4, window_bounds = array<i64: 32, 1>}, {pipeline_mode = #tpu.pipeline_mode<synchronous>, transform_indices = @transform_5, window_bounds = array<i64: 16, 32>}, {pipeline_mode = #tpu.pipeline_mode<synchronous>, transform_indices = @transform_6, window_bounds = array<i64: 16, 1>}, {pipeline_mode = #tpu.pipeline_mode<synchronous>, transform_indices = @transform_7, window_bounds = array<i64: 16, 1>}, {pipeline_mode = #tpu.pipeline_mode<synchronous>, transform_indices = @transform_8, window_bounds = array<i64: 1, 1>}, {transform_indices = @transform_9, window_bounds = array<i64: 1, 1, 128>}]} {
    %c0 = arith.constant 0 : index
    %c0_0 = arith.constant 0 : index
    %0 = vector.load %arg2[%c0, %c0_0] : memref<168x64xf32, #tpu.memory_space<vmem>>, vector<168x64xf32>
    %c0_1 = arith.constant 0 : index
    %c0_2 = arith.constant 0 : index
    %1 = vector.load %arg1[%c0_1, %c0_2] : memref<128x64xf32, #tpu.memory_space<vmem>>, vector<128x64xf32>
    %cst = arith.constant dense<0.000000e+00> : vector<168x128xf32>
    %2 = tpu.matmul %0, %1, %cst {dimension_numbers = #tpu.dot_dimension_numbers<[1], [1], [0], [0], [0, 0, 1, 0], [], []>} : vector<168x64xf32>, vector<128x64xf32>, vector<168x128xf32> -> vector<168x128xf32>
    %3 = vector.extract_strided_slice %2 {offsets = [0, 0], sizes = [64, 128], strides = [1, 1]} : vector<168x128xf32> to vector<64x128xf32>
    %4 = vector.extract_strided_slice %2 {offsets = [64, 0], sizes = [96, 128], strides = [1, 1]} : vector<168x128xf32> to vector<96x128xf32>
    %5 = vector.extract_strided_slice %2 {offsets = [160, 0], sizes = [1, 128], strides = [1, 1]} : vector<168x128xf32> to vector<1x128xf32>
    %cst_3 = arith.constant 0.000000e+00 : f32
    %6 = vector.broadcast %cst_3 : f32 to vector<1x128xf32>
    %7 = arith.maximumf %5, %6 : vector<1x128xf32>
    %c0_4 = arith.constant 0 : index
    %c0_5 = arith.constant 0 : index
    %8 = vector.load %arg3[%c0_4, %c0_5] : memref<4x1xf32, #tpu.memory_space<vmem>>, vector<4x1xf32>
    %cst_6 = arith.constant 0.000000e+00 : f32
    %9 = vector.broadcast %cst_6 : f32 to vector<4x128xf32>
    %10 = vector.broadcast %8 : vector<4x1xf32> to vector<4x128xf32>
    %11 = vector.broadcast %7 : vector<1x128xf32> to vector<4x128xf32>
    %12 = arith.mulf %10, %11 : vector<4x128xf32>
    %13 = arith.addf %9, %12 : vector<4x128xf32>
    %cst_7 = arith.constant 0.000000e+00 : f32
    %14 = vector.broadcast %cst_7 : f32 to vector<4x128xf32>
    %15 = arith.maximumf %13, %14 : vector<4x128xf32>
    %16 = vector.extract_strided_slice %4 {offsets = [0, 0], sizes = [16, 128], strides = [1, 1]} : vector<96x128xf32> to vector<16x128xf32>
    %17 = vector.extract_strided_slice %3 {offsets = [16, 0], sizes = [16, 128], strides = [1, 1]} : vector<64x128xf32> to vector<16x128xf32>
    %18 = arith.mulf %16, %17 : vector<16x128xf32>
    %c0_8 = arith.constant 0 : index
    %c0_9 = arith.constant 0 : index
    %19 = vector.load %arg11[%c0_8, %c0_9] : memref<192x128xf32, #tpu.memory_space<vmem>>, vector<16x128xf32>
    tpu.vector_store %arg11[%c0_8, %c0_9], %18 {strides = array<i32>} : memref<192x128xf32, #tpu.memory_space<vmem>>, vector<16x128xf32>,
    %20 = vector.extract_strided_slice %15 {offsets = [0, 0], sizes = [1, 128], strides = [1, 1]} : vector<4x128xf32> to vector<1x128xf32>
    %21 = vector.extract_strided_slice %15 {offsets = [1, 0], sizes = [1, 128], strides = [1, 1]} : vector<4x128xf32> to vector<1x128xf32>
    %22 = arith.mulf %20, %21 : vector<1x128xf32>
    %23 = vector.broadcast %22 : vector<1x128xf32> to vector<16x128xf32>
    %24 = arith.mulf %18, %23 : vector<16x128xf32>
    %c96 = arith.constant 96 : index
    %c0_10 = arith.constant 0 : index
    %25 = vector.load %arg11[%c96, %c0_10] : memref<192x128xf32, #tpu.memory_space<vmem>>, vector<16x128xf32>
    tpu.vector_store %arg11[%c96, %c0_10], %24 {strides = array<i32>} : memref<192x128xf32, #tpu.memory_space<vmem>>, vector<16x128xf32>,
    %26 = vector.extract_strided_slice %4 {offsets = [16, 0], sizes = [16, 128], strides = [1, 1]} : vector<96x128xf32> to vector<16x128xf32>
    %27 = vector.extract_strided_slice %3 {offsets = [32, 0], sizes = [16, 128], strides = [1, 1]} : vector<64x128xf32> to vector<16x128xf32>
    %28 = arith.mulf %26, %27 : vector<16x128xf32>
    %c16 = arith.constant 16 : index
    %c0_11 = arith.constant 0 : index
    %29 = vector.load %arg11[%c16, %c0_11] : memref<192x128xf32, #tpu.memory_space<vmem>>, vector<16x128xf32>
    tpu.vector_store %arg11[%c16, %c0_11], %28 {strides = array<i32>} : memref<192x128xf32, #tpu.memory_space<vmem>>, vector<16x128xf32>,
    %30 = vector.extract_strided_slice %15 {offsets = [0, 0], sizes = [1, 128], strides = [1, 1]} : vector<4x128xf32> to vector<1x128xf32>
    %31 = vector.extract_strided_slice %15 {offsets = [2, 0], sizes = [1, 128], strides = [1, 1]} : vector<4x128xf32> to vector<1x128xf32>
    %32 = arith.mulf %30, %31 : vector<1x128xf32>
    %33 = vector.broadcast %32 : vector<1x128xf32> to vector<16x128xf32>
    %34 = arith.mulf %28, %33 : vector<16x128xf32>
    %c112 = arith.constant 112 : index
    %c0_12 = arith.constant 0 : index
    %35 = vector.load %arg11[%c112, %c0_12] : memref<192x128xf32, #tpu.memory_space<vmem>>, vector<16x128xf32>
    tpu.vector_store %arg11[%c112, %c0_12], %34 {strides = array<i32>} : memref<192x128xf32, #tpu.memory_space<vmem>>, vector<16x128xf32>,
    %36 = vector.extract_strided_slice %4 {offsets = [32, 0], sizes = [16, 128], strides = [1, 1]} : vector<96x128xf32> to vector<16x128xf32>
    %37 = vector.extract_strided_slice %3 {offsets = [48, 0], sizes = [16, 128], strides = [1, 1]} : vector<64x128xf32> to vector<16x128xf32>
    %38 = arith.mulf %36, %37 : vector<16x128xf32>
    %c32 = arith.constant 32 : index
    %c0_13 = arith.constant 0 : index
    %39 = vector.load %arg11[%c32, %c0_13] : memref<192x128xf32, #tpu.memory_space<vmem>>, vector<16x128xf32>
    tpu.vector_store %arg11[%c32, %c0_13], %38 {strides = array<i32>} : memref<192x128xf32, #tpu.memory_space<vmem>>, vector<16x128xf32>,
    %40 = vector.extract_strided_slice %15 {offsets = [0, 0], sizes = [1, 128], strides = [1, 1]} : vector<4x128xf32> to vector<1x128xf32>
    %41 = vector.extract_strided_slice %15 {offsets = [3, 0], sizes = [1, 128], strides = [1, 1]} : vector<4x128xf32> to vector<1x128xf32>
    %42 = arith.mulf %40, %41 : vector<1x128xf32>
    %43 = vector.broadcast %42 : vector<1x128xf32> to vector<16x128xf32>
    %44 = arith.mulf %38, %43 : vector<16x128xf32>
    %c128 = arith.constant 128 : index
    %c0_14 = arith.constant 0 : index
    %45 = vector.load %arg11[%c128, %c0_14] : memref<192x128xf32, #tpu.memory_space<vmem>>, vector<16x128xf32>
    tpu.vector_store %arg11[%c128, %c0_14], %44 {strides = array<i32>} : memref<192x128xf32, #tpu.memory_space<vmem>>, vector<16x128xf32>,
    %46 = vector.extract_strided_slice %4 {offsets = [48, 0], sizes = [16, 128], strides = [1, 1]} : vector<96x128xf32> to vector<16x128xf32>
    %47 = vector.extract_strided_slice %3 {offsets = [32, 0], sizes = [16, 128], strides = [1, 1]} : vector<64x128xf32> to vector<16x128xf32>
    %48 = arith.mulf %46, %47 : vector<16x128xf32>
    %c48 = arith.constant 48 : index
    %c0_15 = arith.constant 0 : index
    %49 = vector.load %arg11[%c48, %c0_15] : memref<192x128xf32, #tpu.memory_space<vmem>>, vector<16x128xf32>
    tpu.vector_store %arg11[%c48, %c0_15], %48 {strides = array<i32>} : memref<192x128xf32, #tpu.memory_space<vmem>>, vector<16x128xf32>,
    %50 = vector.extract_strided_slice %15 {offsets = [1, 0], sizes = [1, 128], strides = [1, 1]} : vector<4x128xf32> to vector<1x128xf32>
    %51 = vector.extract_strided_slice %15 {offsets = [2, 0], sizes = [1, 128], strides = [1, 1]} : vector<4x128xf32> to vector<1x128xf32>
    %52 = arith.mulf %50, %51 : vector<1x128xf32>
    %53 = vector.broadcast %52 : vector<1x128xf32> to vector<16x128xf32>
    %54 = arith.mulf %48, %53 : vector<16x128xf32>
    %c144 = arith.constant 144 : index
    %c0_16 = arith.constant 0 : index
    %55 = vector.load %arg11[%c144, %c0_16] : memref<192x128xf32, #tpu.memory_space<vmem>>, vector<16x128xf32>
    tpu.vector_store %arg11[%c144, %c0_16], %54 {strides = array<i32>} : memref<192x128xf32, #tpu.memory_space<vmem>>, vector<16x128xf32>,
    %56 = vector.extract_strided_slice %4 {offsets = [64, 0], sizes = [16, 128], strides = [1, 1]} : vector<96x128xf32> to vector<16x128xf32>
    %57 = vector.extract_strided_slice %3 {offsets = [48, 0], sizes = [16, 128], strides = [1, 1]} : vector<64x128xf32> to vector<16x128xf32>
    %58 = arith.mulf %56, %57 : vector<16x128xf32>
    %c64 = arith.constant 64 : index
    %c0_17 = arith.constant 0 : index
    %59 = vector.load %arg11[%c64, %c0_17] : memref<192x128xf32, #tpu.memory_space<vmem>>, vector<16x128xf32>
    tpu.vector_store %arg11[%c64, %c0_17], %58 {strides = array<i32>} : memref<192x128xf32, #tpu.memory_space<vmem>>, vector<16x128xf32>,
    %60 = vector.extract_strided_slice %15 {offsets = [1, 0], sizes = [1, 128], strides = [1, 1]} : vector<4x128xf32> to vector<1x128xf32>
    %61 = vector.extract_strided_slice %15 {offsets = [3, 0], sizes = [1, 128], strides = [1, 1]} : vector<4x128xf32> to vector<1x128xf32>
    %62 = arith.mulf %60, %61 : vector<1x128xf32>
    %63 = vector.broadcast %62 : vector<1x128xf32> to vector<16x128xf32>
    %64 = arith.mulf %58, %63 : vector<16x128xf32>
    %c160 = arith.constant 160 : index
    %c0_18 = arith.constant 0 : index
    %65 = vector.load %arg11[%c160, %c0_18] : memref<192x128xf32, #tpu.memory_space<vmem>>, vector<16x128xf32>
    tpu.vector_store %arg11[%c160, %c0_18], %64 {strides = array<i32>} : memref<192x128xf32, #tpu.memory_space<vmem>>, vector<16x128xf32>,
    %66 = vector.extract_strided_slice %4 {offsets = [80, 0], sizes = [16, 128], strides = [1, 1]} : vector<96x128xf32> to vector<16x128xf32>
    %67 = vector.extract_strided_slice %3 {offsets = [48, 0], sizes = [16, 128], strides = [1, 1]} : vector<64x128xf32> to vector<16x128xf32>
    %68 = arith.mulf %66, %67 : vector<16x128xf32>
    %c80 = arith.constant 80 : index
    %c0_19 = arith.constant 0 : index
    %69 = vector.load %arg11[%c80, %c0_19] : memref<192x128xf32, #tpu.memory_space<vmem>>, vector<16x128xf32>
    tpu.vector_store %arg11[%c80, %c0_19], %68 {strides = array<i32>} : memref<192x128xf32, #tpu.memory_space<vmem>>, vector<16x128xf32>,
    %70 = vector.extract_strided_slice %15 {offsets = [2, 0], sizes = [1, 128], strides = [1, 1]} : vector<4x128xf32> to vector<1x128xf32>
    %71 = vector.extract_strided_slice %15 {offsets = [3, 0], sizes = [1, 128], strides = [1, 1]} : vector<4x128xf32> to vector<1x128xf32>
    %72 = arith.mulf %70, %71 : vector<1x128xf32>
    %73 = vector.broadcast %72 : vector<1x128xf32> to vector<16x128xf32>
    %74 = arith.mulf %68, %73 : vector<16x128xf32>
    %c176 = arith.constant 176 : index
    %c0_20 = arith.constant 0 : index
    %75 = vector.load %arg11[%c176, %c0_20] : memref<192x128xf32, #tpu.memory_space<vmem>>, vector<16x128xf32>
    tpu.vector_store %arg11[%c176, %c0_20], %74 {strides = array<i32>} : memref<192x128xf32, #tpu.memory_space<vmem>>, vector<16x128xf32>,
    %c0_21 = arith.constant 0 : index
    %c0_22 = arith.constant 0 : index
    %76 = vector.load %arg4[%c0_21, %c0_22] : memref<32x192xf32, #tpu.memory_space<vmem>>, vector<32x192xf32>
    %c0_23 = arith.constant 0 : index
    %c0_24 = arith.constant 0 : index
    %77 = vector.load %arg11[%c0_23, %c0_24] : memref<192x128xf32, #tpu.memory_space<vmem>>, vector<192x128xf32>
    %cst_25 = arith.constant dense<0.000000e+00> : vector<32x128xf32>
    %78 = tpu.matmul %76, %77, %cst_25 {dimension_numbers = #tpu.dot_dimension_numbers<[1], [0], [0], [1], [0, 0, 1, 1], [], []>} : vector<32x192xf32>, vector<192x128xf32>, vector<32x128xf32> -> vector<32x128xf32>
    %c0_26 = arith.constant 0 : index
    %c0_27 = arith.constant 0 : index
    %79 = vector.load %arg5[%c0_26, %c0_27] : memref<32x1xf32, #tpu.memory_space<vmem>>, vector<32x1xf32>
    %80 = vector.broadcast %79 : vector<32x1xf32> to vector<32x128xf32>
    %81 = arith.addf %78, %80 : vector<32x128xf32>
    %cst_28 = arith.constant 0.000000e+00 : f32
    %82 = vector.broadcast %cst_28 : f32 to vector<32x128xf32>
    %83 = arith.maximumf %81, %82 : vector<32x128xf32>
    %c0_29 = arith.constant 0 : index
    %c0_30 = arith.constant 0 : index
    %84 = vector.load %arg6[%c0_29, %c0_30] : memref<16x32xf32, #tpu.memory_space<vmem>>, vector<16x32xf32>
    %cst_31 = arith.constant dense<0.000000e+00> : vector<16x128xf32>
    %85 = tpu.matmul %84, %83, %cst_31 {dimension_numbers = #tpu.dot_dimension_numbers<[1], [0], [0], [1], [0, 0, 1, 1], [], []>} : vector<16x32xf32>, vector<32x128xf32>, vector<16x128xf32> -> vector<16x128xf32>
    %c0_32 = arith.constant 0 : index
    %c0_33 = arith.constant 0 : index
    %86 = vector.load %arg7[%c0_32, %c0_33] : memref<16x1xf32, #tpu.memory_space<vmem>>, vector<16x1xf32>
    %87 = vector.broadcast %86 : vector<16x1xf32> to vector<16x128xf32>
    %88 = arith.addf %85, %87 : vector<16x128xf32>
    %cst_34 = arith.constant 0.000000e+00 : f32
    %89 = vector.broadcast %cst_34 : f32 to vector<16x128xf32>
    %90 = arith.maximumf %88, %89 : vector<16x128xf32>
    %c0_35 = arith.constant 0 : index
    %c0_36 = arith.constant 0 : index
    %91 = vector.load %arg8[%c0_35, %c0_36] : memref<16x1xf32, #tpu.memory_space<vmem>>, vector<16x1xf32>
    %92 = vector.broadcast %91 : vector<16x1xf32> to vector<16x128xf32>
    %93 = arith.mulf %90, %92 : vector<16x128xf32>
    %cst_37 = arith.constant dense<0.000000e+00> : vector<128xf32>
    %94 = vector.multi_reduction <add>, %93, %cst_37 [0] : vector<16x128xf32> to vector<128xf32>
    %95 = vector.shape_cast %94 : vector<128xf32> to vector<1x128xf32>
    %c0_38 = arith.constant 0 : index
    %c0_39 = arith.constant 0 : index
    %96 = vector.load %arg9[%c0_38, %c0_39] : memref<1x1xf32, #tpu.memory_space<vmem>>, vector<1x1xf32>
    %97 = vector.broadcast %96 : vector<1x1xf32> to vector<1x128xf32>
    %98 = arith.addf %95, %97 : vector<1x128xf32>
    %99 = arith.negf %98 : vector<1x128xf32>
    %100 = math.exp %99 : vector<1x128xf32>
    %cst_40 = arith.constant 1.000000e+00 : f32
    %101 = vector.broadcast %cst_40 : f32 to vector<1x128xf32>
    %102 = arith.addf %101, %100 : vector<1x128xf32>
    %103 = arith.divf %101, %102 : vector<1x128xf32>
    %c0_41 = arith.constant 0 : index
    %c0_42 = arith.constant 0 : index
    %c0_43 = arith.constant 0 : index
    %104 = vector.load %arg10[%c0_41, %c0_42, %c0_43] : memref<1x1x128xf32, #tpu.memory_space<vmem>>, vector<1x1x128xf32>
    %105 = vector.shape_cast %104 : vector<1x1x128xf32> to vector<1x128xf32>
    %106 = vector.shape_cast %103 : vector<1x128xf32> to vector<1x1x128xf32>
    tpu.vector_store %arg10[%c0_41, %c0_42, %c0_43], %106 {strides = array<i32>} : memref<1x1x128xf32, #tpu.memory_space<vmem>>, vector<1x1x128xf32>,
    return
  }
  func.func @transform_0(%arg0: i32) -> (i32, i32) {
    %c0_i32 = arith.constant 0 : i32
    %c0_i32_0 = arith.constant 0 : i32
    return %arg0, %c0_i32 : i32, i32
  }
  func.func @transform_1(%arg0: i32) -> (i32, i32) {
    %c0_i32 = arith.constant 0 : i32
    %c0_i32_0 = arith.constant 0 : i32
    %c0_i32_1 = arith.constant 0 : i32
    return %c0_i32, %c0_i32_0 : i32, i32
  }
  func.func @transform_2(%arg0: i32) -> (i32, i32) {
    %c0_i32 = arith.constant 0 : i32
    %c0_i32_0 = arith.constant 0 : i32
    %c0_i32_1 = arith.constant 0 : i32
    return %c0_i32, %c0_i32_0 : i32, i32
  }
  func.func @transform_3(%arg0: i32) -> (i32, i32) {
    %c0_i32 = arith.constant 0 : i32
    %c0_i32_0 = arith.constant 0 : i32
    %c0_i32_1 = arith.constant 0 : i32
    return %c0_i32, %c0_i32_0 : i32, i32
  }
  func.func @transform_4(%arg0: i32) -> (i32, i32) {
    %c0_i32 = arith.constant 0 : i32
    %c0_i32_0 = arith.constant 0 : i32
    %c0_i32_1 = arith.constant 0 : i32
    return %c0_i32, %c0_i32_0 : i32, i32
  }
  func.func @transform_5(%arg0: i32) -> (i32, i32) {
    %c0_i32 = arith.constant 0 : i32
    %c0_i32_0 = arith.constant 0 : i32
    %c0_i32_1 = arith.constant 0 : i32
    return %c0_i32, %c0_i32_0 : i32, i32
  }
  func.func @transform_6(%arg0: i32) -> (i32, i32) {
    %c0_i32 = arith.constant 0 : i32
    %c0_i32_0 = arith.constant 0 : i32
    %c0_i32_1 = arith.constant 0 : i32
    return %c0_i32, %c0_i32_0 : i32, i32
  }
  func.func @transform_7(%arg0: i32) -> (i32, i32) {
    %c0_i32 = arith.constant 0 : i32
    %c0_i32_0 = arith.constant 0 : i32
    %c0_i32_1 = arith.constant 0 : i32
    return %c0_i32, %c0_i32_0 : i32, i32
  }
  func.func @transform_8(%arg0: i32) -> (i32, i32) {
    %c0_i32 = arith.constant 0 : i32
    %c0_i32_0 = arith.constant 0 : i32
    %c0_i32_1 = arith.constant 0 : i32
    return %c0_i32, %c0_i32_0 : i32, i32
  }
  func.func @transform_9(%arg0: i32) -> (i32, i32, i32) {
    %c0_i32 = arith.constant 0 : i32
    %c0_i32_0 = arith.constant 0 : i32
    %c0_i32_1 = arith.constant 0 : i32
    return %arg0, %c0_i32, %c0_i32_0 : i32, i32, i32
  }
}

</mosaic_0001>

<bundles_post_ra>
// kernel: fibinet_forward.1
= control target key start
LH: loop header
LB: loop body
LE: loop exit
PB: predicated region body
PF: predicated region fallthrough
CT: control target
= control target key end

     0   :  { %vm71_vm0 = vcmask 523264   ;;  %v1024_v0 = vmov 0.0|0.0   ;;  %vm1025_vm2 = vmmov 0   ;;  %v1026_v4 = vmov 0.0   ;;  %s1390_s0 = inlined_call_operand.vmem [shape: f32[128,64], index: 0, kind: input, shape index: {}]   ;;  %s1391_s2 = inlined_call_operand.vmem [shape: f32[4,1], index: 2, kind: input, shape index: {}]   ;;  %s1392_s4 = inlined_call_operand.vmem [shape: f32[32,1], index: 4, kind: input, shape index: {}]   ;;  %s1393_s6 = inlined_call_operand.vmem [shape: f32[16,1], index: 6, kind: input, shape index: {}]   ;;  %s1394_s7 = inlined_call_operand.vmem [shape: f32[16,1], index: 7, kind: input, shape index: {}]   ;;  %s1395_s1 = inlined_call_operand.vmem [shape: f32[168,64], index: 1, kind: input, shape index: {}]   ;;  %s1396_s3 = inlined_call_operand.vmem [shape: f32[32,192], index: 3, kind: input, shape index: {}]   ;;  %s1397_s8 = inlined_call_operand.<no memory space> [shape: f32[1,1], index: 8, kind: input, shape index: {}]   ;;  %s1398_s5 = inlined_call_operand.vmem [shape: f32[16,32], index: 5, kind: input, shape index: {}]   ;;  %s1399_s9 = inlined_call_operand.vmem [shape: f32[1,1,128], index: 9, kind: output, shape index: {}]  }
   0x1   :  { %938 = vmatprep.subr.bf16.mxu0 %v1024_v0  ;;  %v55_v1 = vld [vmem:[%s1390_s0] sm:$0xff]  ;;  %v56_v2 = vld [vmem:[%s1390_s0 + $0x8] sm:$0xff]  ;;  %vm1087_vm1 = vmpackc.low %vm71_vm0, %vm71_vm0  ;;  %864 = vmatprep.mubr.msk.f32.mxu0 %vm1025_vm2, %v1026_v4  ;;  %v1027_v12 = vmov 0   ;;  %v14_v60 = vstv %s1397_s8  ;;  %vm618_vm3 = vcmask 261120  }
   0x2   :  { %v939_v5 = vpack.c.bf16 %v56_v2, %v55_v1  ;;  %970 = vmatprep.subr.bf16.mxu1 %v1024_v0  ;;  %v57_v6 = vld [vmem:[%s1390_s0 + $0x10] sm:$0xff]  ;;  %v58_v7 = vld [vmem:[%s1390_s0 + $0x18] sm:$0xff]  ;;  %v59_v9 = vld [vmem:[%s1390_s0 + $0x20] sm:$0xff]  ;;  %1018 = vset.pattern.permute.xlu0 %v1027_v12  ;;  %15 = vst [vmem:[#allocation3] sm:$0x1] %v14_v60 }
   0x3   :  { %v943_v8 = vpack.c.bf16 %v58_v7, %v57_v6  ;;  %v60_v10 = vld [vmem:[%s1390_s0 + $0x28] sm:$0xff]  ;;  %v352_v13 = vld [vmem:[%s1391_s2] sm:$0xf]  ;;  %v61_v14 = vld [vmem:[%s1390_s0 + $0x30] sm:$0xff]  ;;  %1019 = vset.pattern.permute.xlu1 %v1027_v12 }
   0x4   :  { %941 = vmatpush3.bf16.xpose.msk.msra.mxu0 %vm1087_vm1, %v939_v5  ;;  %v947_v11 = vpack.c.bf16 %v60_v10, %v59_v9  ;;  %v62_v15 = vld [vmem:[%s1390_s0 + $0x38] sm:$0xff]  ;;  %355 = vperm.xlu0 %1018, %v352_v13   ;;  %v479_v16 = vld [vmem:[%s1392_s4] sm:$0xff]  ;;  %v64_v20 = vld [vmem:[%s1390_s0 + $0x48] sm:$0xff] }
   0x5   :  { %942 = vmatprep.subr.bf16.mxu0 %v1024_v0  ;;  %v951_v17 = vpack.c.bf16 %v62_v15, %v61_v14  ;;  %v482_v18 = vld [vmem:[%s1392_s4 + $0x18] sm:$0xff]  ;;  %v63_v19 = vld [vmem:[%s1390_s0 + $0x40] sm:$0xff]  ;;  %v607_v21 = vld [vmem:[%s1393_s6 + $0x8] sm:$0xff] }
   0x6   :  { %v955_v22 = vpack.c.bf16 %v64_v20, %v63_v19  ;;  %v703_v23 = vld [vmem:[%s1394_s7 + $0x8] sm:$0xff]  ;;  %v65_v24 = vld [vmem:[%s1390_s0 + $0x50] sm:$0xff]  ;;  %v66_v25 = vld [vmem:[%s1390_s0 + $0x58] sm:$0xff] }
   0x7   :  { %v959_v26 = vpack.c.bf16 %v66_v25, %v65_v24  ;;  %v67_v27 = vld [vmem:[%s1390_s0 + $0x60] sm:$0xff]  ;;  %v68_v28 = vld [vmem:[%s1390_s0 + $0x68] sm:$0xff]  ;;  %v69_v30 = vld [vmem:[%s1390_s0 + $0x70] sm:$0xff] }
   0x8   :  { %485 = vperm.xlu0 %1018, %v479_v16   ;;  %v963_v29 = vpack.c.bf16 %v68_v28, %v67_v27  ;;  %v70_v31 = vld [vmem:[%s1390_s0 + $0x78] sm:$0xff]  ;;  %v34_v33 = vld [vmem:[%s1395_s1] sm:$0xff]  ;;  %v35_v34 = vld [vmem:[%s1395_s1 + $0x8] sm:$0xff] }
   0x9   :  { %v967_v32 = vpack.c.bf16 %v70_v31, %v69_v30  ;;  %v36_v35 = vld [vmem:[%s1395_s1 + $0x10] sm:$0xff]  ;;  %v37_v36 = vld [vmem:[%s1395_s1 + $0x18] sm:$0xff]  ;;  %v38_v37 = vld [vmem:[%s1395_s1 + $0x20] sm:$0xff] }
   0xa   :  { %v39_v38 = vld [vmem:[%s1395_s1 + $0x28] sm:$0xff]  ;;  %v40_v39 = vld [vmem:[%s1395_s1 + $0x30] sm:$0xff]  ;;  %v41_v40 = vld [vmem:[%s1395_s1 + $0x38] sm:$0xff] }
   0xb   :  { %v42_v41 = vld [vmem:[%s1395_s1 + $0x40] sm:$0xff]  ;;  %v43_v42 = vld [vmem:[%s1395_s1 + $0x48] sm:$0xff]  ;;  %v44_v43 = vld [vmem:[%s1395_s1 + $0x50] sm:$0xff] }
   0xc   :  { %945 = vmatpush3.bf16.xpose.msk.msra.mxu0 %vm1087_vm1, %v943_v8  ;;  %500 = vperm.xlu0 %1018, %v482_v18   ;;  %v45_v44 = vld [vmem:[%s1395_s1 + $0x58] sm:$0xff]  ;;  %v46_v45 = vld [vmem:[%s1395_s1 + $0x60] sm:$0xff]  ;;  %v47_v46 = vld [vmem:[%s1395_s1 + $0x68] sm:$0xff] }
   0xd   :  { %946 = vmatprep.subr.bf16.mxu0 %v1024_v0  ;;  %v48_v47 = vld [vmem:[%s1395_s1 + $0x70] sm:$0xff]  ;;  %v49_v48 = vld [vmem:[%s1395_s1 + $0x78] sm:$0xff]  ;;  %v50_v49 = vld [vmem:[%s1395_s1 + $0x80] sm:$0xff] }
   0xe   :  { %v51_v50 = vld [vmem:[%s1395_s1 + $0x88] sm:$0xff]  ;;  %v52_v51 = vld [vmem:[%s1395_s1 + $0x90] sm:$0xff]  ;;  %v53_v52 = vld [vmem:[%s1395_s1 + $0x98] sm:$0xff] }
   0xf   :  { %v54_v53 = vld [vmem:[%s1395_s1 + $0xa0] sm:$0xff]  ;;  %v448_v54 = vld [vmem:[%s1396_s3 + $0x8] sm:$0xff]  ;;  %v481_v62 = vld [vmem:[%s1392_s4 + $0x10] sm:$0xff] }
  0x10   :  { %615 = vperm.xlu0 %1018, %v607_v21   ;;  %782 = vmatprep.mubr.msk.f32.mxu1 %vm71_vm0, %v448_v54  ;;  %v480_v59 = vld [vmem:[%s1392_s4 + $0x8] sm:$0xff]  ;;  %v606_v2 = vld [vmem:[%s1393_s6] sm:$0xff] }
  0x11   :  { %490 = vperm.xlu1 %1019, %v480_v59   ;;  %v702_v5 = vld [vmem:[%s1394_s7] sm:$0xff] }
  0x12   :  { %v723_v8 = vld [vmem:[#allocation3] sm:$0x1] }
  0x14   :  { %949 = vmatpush3.bf16.xpose.msk.msra.mxu0 %vm1087_vm1, %v947_v11  ;;  %711 = vperm.xlu0 %1018, %v703_v23  }
  0x15   :  { %950 = vmatprep.subr.bf16.mxu0 %v1024_v0  ;;  %495 = vperm.xlu1 %1019, %v481_v62  }
  0x19   :  { %610 = vperm.xlu1 %1019, %v606_v2  }
  0x1c   :  { %953 = vmatpush3.bf16.xpose.msk.msra.mxu0 %vm1087_vm1, %v951_v17 }
  0x1d   :  { %954 = vmatprep.subr.bf16.mxu0 %v1024_v0  ;;  %706 = vperm.xlu1 %1019, %v702_v5  }
  0x21   :  { %726 = vperm.xlu1 %1019, %v723_v8  }
  0x24   :  { %957 = vmatpush3.bf16.xpose.msk.msra.mxu0 %vm1087_vm1, %v955_v22 }
  0x25   :  { %958 = vmatprep.subr.bf16.mxu0 %v1024_v0 }
  0x2c   :  { %961 = vmatpush3.bf16.xpose.msk.msra.mxu0 %vm1087_vm1, %v959_v26 }
  0x2d   :  { %962 = vmatprep.subr.bf16.mxu0 %v1024_v0 }
  0x34   :  { %965 = vmatpush3.bf16.xpose.msk.msra.mxu0 %vm1087_vm1, %v963_v29 }
  0x35   :  { %966 = vmatprep.subr.bf16.mxu0 %v1024_v0 }
  0x3c   :  { %969 = vmatpush3.bf16.xpose.msk.msra.mxu0 %vm1087_vm1, %v967_v32 }
  0x43   :  { %865 = vmatmul.mubr.msk.f32.vlgmr.msra.gmra.mrb[0].mxu0 %vm71_vm0, %v34_v33 }
  0x44   :  { %867 = vmatprep.mubr.msk.f32.mxu0 %vm1025_vm2, %v1026_v4 }
  0x47   :  { %868 = vmatmul.mubr.msk.f32.gmra.mrb[2].mxu0 %vm71_vm0, %v35_v34 }
  0x48   :  { %870 = vmatprep.mubr.msk.f32.mxu0 %vm1025_vm2, %v1026_v4 }
  0x4b   :  { %871 = vmatmul.mubr.msk.f32.gmra.mrb[4].mxu0 %vm71_vm0, %v36_v35 }
  0x4c   :  { %873 = vmatprep.mubr.msk.f32.mxu0 %vm1025_vm2, %v1026_v4 }
  0x4f   :  { %874 = vmatmul.mubr.msk.f32.gmra.mrb[6].mxu0 %vm71_vm0, %v37_v36 }
  0x50   :  { %876 = vmatprep.mubr.msk.f32.mxu0 %vm1025_vm2, %v1026_v4 }
  0x53   :  { %877 = vmatmul.mubr.msk.f32.gmra.mrb[8].mxu0 %vm71_vm0, %v38_v37 }
  0x54   :  { %879 = vmatprep.mubr.msk.f32.mxu0 %vm1025_vm2, %v1026_v4 }
  0x57   :  { %880 = vmatmul.mubr.msk.f32.gmra.mrb[10].mxu0 %vm71_vm0, %v39_v38 }
  0x58   :  { %882 = vmatprep.mubr.msk.f32.mxu0 %vm1025_vm2, %v1026_v4 }
  0x5b   :  { %883 = vmatmul.mubr.msk.f32.gmra.mrb[12].mxu0 %vm71_vm0, %v40_v39 }
  0x5c   :  { %885 = vmatprep.mubr.msk.f32.mxu0 %vm1025_vm2, %v1026_v4 }
  0x5f   :  { %886 = vmatmul.mubr.msk.f32.gmra.mrb[14].mxu0 %vm71_vm0, %v41_v40 }
  0x60   :  { %888 = vmatprep.mubr.msk.f32.mxu0 %vm1025_vm2, %v1026_v4 }
  0x63   :  { %889 = vmatmul.mubr.msk.f32.gmra.mrb[16].mxu0 %vm71_vm0, %v42_v41 }
  0x64   :  { %891 = vmatprep.mubr.msk.f32.mxu0 %vm1025_vm2, %v1026_v4 }
  0x67   :  { %892 = vmatmul.mubr.msk.f32.gmra.mrb[18].mxu0 %vm71_vm0, %v43_v42 }
  0x68   :  { %894 = vmatprep.mubr.msk.f32.mxu0 %vm1025_vm2, %v1026_v4 }
  0x6b   :  { %895 = vmatmul.mubr.msk.f32.gmra.mrb[20].mxu0 %vm71_vm0, %v44_v43 }
  0x6c   :  { %897 = vmatprep.mubr.msk.f32.mxu0 %vm1025_vm2, %v1026_v4 }
  0x6f   :  { %898 = vmatmul.mubr.msk.f32.gmra.mrb[22].mxu0 %vm71_vm0, %v45_v44 }
  0x70   :  { %900 = vmatprep.mubr.msk.f32.mxu0 %vm1025_vm2, %v1026_v4 }
  0x73   :  { %901 = vmatmul.mubr.msk.f32.gmra.mrb[24].mxu0 %vm71_vm0, %v46_v45 }
  0x74   :  { %903 = vmatprep.mubr.msk.f32.mxu0 %vm1025_vm2, %v1026_v4 }
  0x77   :  { %904 = vmatmul.mubr.msk.f32.gmra.mrb[26].mxu0 %vm71_vm0, %v47_v46 }
  0x78   :  { %906 = vmatprep.mubr.msk.f32.mxu0 %vm1025_vm2, %v1026_v4 }
  0x7b   :  { %907 = vmatmul.mubr.msk.f32.gmra.mrb[28].mxu0 %vm71_vm0, %v48_v47 }
  0x7c   :  { %909 = vmatprep.mubr.msk.f32.mxu0 %vm1025_vm2, %v1026_v4 }
  0x7f   :  { %910 = vmatmul.mubr.msk.f32.gmra.mrb[30].mxu0 %vm71_vm0, %v49_v48 }
  0x80   :  { %912 = vmatprep.mubr.msk.f32.mxu0 %vm1025_vm2, %v1026_v4 }
  0x83   :  { %913 = vmatmul.mubr.msk.f32.gmra.mrb[32].mxu0 %vm71_vm0, %v50_v49  ;;  %v358_v49 = vlaneseq }
  0x84   :  { %915 = vmatprep.mubr.msk.f32.mxu0 %vm1025_vm2, %v1026_v4 }
  0x87   :  { %916 = vmatmul.mubr.msk.f32.gmra.mrb[34].mxu0 %vm71_vm0, %v51_v50 }
  0x88   :  { %918 = vmatprep.mubr.msk.f32.mxu0 %vm1025_vm2, %v1026_v4 }
  0x8b   :  { %919 = vmatmul.mubr.msk.f32.gmra.mrb[36].mxu0 %vm71_vm0, %v52_v51 }
  0x8c   :  { %921 = vmatprep.mubr.msk.f32.mxu0 %vm1025_vm2, %v1026_v4 }
  0x8f   :  { %922 = vmatmul.mubr.msk.f32.gmra.mrb[38].mxu0 %vm71_vm0, %v53_v52 }
  0x90   :  { %924 = vmatprep.mubr.msk.f32.mxu0 %vm1025_vm2, %v1026_v4 }
  0x93   :  { %925 = vmatmul.mubr.msk.f32.gmra.mrb[40].mxu0 %vm71_vm0, %v54_v53  ;;  %v359_v53 = vshrl.u32 %v358_v49, 7 }
 0x116   :  { %v249_v55 = vpop.f32.mrb[0].mxu0 }
 0x117   :  { %v866_v56 = vpop.f32.mrb[1].mxu0 }
 0x11a   :  { %v253_v57 = vpop.f32.mrb[2].mxu0 }
 0x11b   :  { %v869_v58 = vpop.f32.mrb[3].mxu0 }
 0x11c   :  { %v1337_v58 = vsub.s32 0, %v359_v53 }
 0x11e   :  { %v257_v61 = vpop.f32.mrb[4].mxu0 }
 0x11f   :  { %v872_v63 = vpop.f32.mrb[5].mxu0 }
 0x120   :  { %v356_v63 = vpop.permute.xlu0 %355 }
 0x122   :  { %v262_v1 = vpop.f32.mrb[6].mxu0 }
 0x123   :  { %v875_v3 = vpop.f32.mrb[7].mxu0 }
 0x126   :  { %v267_v4 = vpop.f32.mrb[8].mxu0 }
 0x127   :  { %v878_v6 = vpop.f32.mrb[9].mxu0 }
 0x128   :  { %v417_v6 = vsub.s32 1, %v359_v53 }
 0x12a   :  { %v272_v7 = vpop.f32.mrb[10].mxu0 }
 0x12b   :  { %v881_v9 = vpop.f32.mrb[11].mxu0 }
 0x12e   :  { %v277_v10 = vpop.f32.mrb[12].mxu0 }
 0x12f   :  { %v884_v11 = vpop.f32.mrb[13].mxu0 }
 0x132   :  { %v282_v12 = vpop.f32.mrb[14].mxu0 }
 0x133   :  { %v887_v13 = vpop.f32.mrb[15].mxu0 }
 0x136   :  { %v287_v14 = vpop.f32.mrb[16].mxu0 }
 0x137   :  { %v1317_v15 = vmul.f32 %v287_v14, %v257_v61  ;;  %v890_v16 = vpop.f32.mrb[17].mxu0 }
 0x13a   :  { %v292_v17 = vpop.f32.mrb[18].mxu0 }
 0x13b   :  { %v1319_v18 = vmul.f32 %v292_v17, %v262_v1  ;;  %v893_v19 = vpop.f32.mrb[19].mxu0 }
 0x13d   :  { %v971_v20 = vpack.c.bf16 %v1319_v18, %v1317_v15 }
 0x13e   :  { %v297_v21 = vpop.f32.mrb[20].mxu0 }
 0x13f   :  { %v1323_v22 = vmul.f32 %v297_v21, %v267_v4  ;;  %v896_v23 = vpop.f32.mrb[21].mxu0  ;;  %972 = vmatpush1.bf16.msra.mxu1 %v971_v20 }
 0x140   :  { %973 = vmatprep.subr.bf16.mxu1 %v1024_v0 }
 0x142   :  { %v302_v24 = vpop.f32.mrb[22].mxu0 }
 0x143   :  { %v1326_v25 = vmul.f32 %v302_v24, %v272_v7  ;;  %v899_v26 = vpop.f32.mrb[23].mxu0 }
 0x145   :  { %v974_v27 = vpack.c.bf16 %v1326_v25, %v1323_v22 }
 0x146   :  { %v307_v28 = vpop.f32.mrb[24].mxu0 }
 0x147   :  { %v1330_v29 = vmul.f32 %v307_v28, %v277_v10  ;;  %v902_v30 = vpop.f32.mrb[25].mxu0  ;;  %975 = vmatpush1.bf16.msra.mxu1 %v974_v27 }
 0x148   :  { %976 = vmatprep.subr.bf16.mxu1 %v1024_v0 }
 0x14a   :  { %v312_v31 = vpop.f32.mrb[26].mxu0 }
 0x14b   :  { %v397_v32 = vmul.f32 %v312_v31, %v282_v12  ;;  %v905_v33 = vpop.f32.mrb[27].mxu0 }
 0x14d   :  { %v977_v34 = vpack.c.bf16 %v397_v32, %v1330_v29 }
 0x14e   :  { %v317_v35 = vpop.f32.mrb[28].mxu0 }
 0x14f   :  { %v411_v36 = vmul.f32 %v317_v35, %v267_v4  ;;  %v908_v37 = vpop.f32.mrb[29].mxu0  ;;  %978 = vmatpush1.bf16.msra.mxu1 %v977_v34 }
 0x150   :  { %979 = vmatprep.subr.bf16.mxu1 %v1024_v0 }
 0x152   :  { %v322_v38 = vpop.f32.mrb[30].mxu0 }
 0x153   :  { %v412_v39 = vmul.f32 %v322_v38, %v272_v7  ;;  %v911_v40 = vpop.f32.mrb[31].mxu0  ;;  %v441_v7 = vsub.s32 2, %v359_v53 }
 0x155   :  { %v980_v41 = vpack.c.bf16 %v412_v39, %v411_v36 }
 0x156   :  { %v327_v42 = vpop.f32.mrb[32].mxu0 }
 0x157   :  { %v423_v43 = vmul.f32 %v327_v42, %v277_v10  ;;  %v914_v44 = vpop.f32.mrb[33].mxu0  ;;  %981 = vmatpush1.bf16.msra.mxu1 %v980_v41  ;;  %v604_v41 = vld [vmem:[%s1398_s5] sm:$0xff] }
 0x158   :  { %982 = vmatprep.subr.bf16.mxu1 %v1024_v0  ;;  %v486_v44 = vpop.permute.xlu0 %485 }
 0x15a   :  { %v332_v45 = vpop.f32.mrb[34].mxu0 }
 0x15b   :  { %v424_v46 = vmul.f32 %v332_v45, %v282_v12  ;;  %v917_v47 = vpop.f32.mrb[35].mxu0 }
 0x15d   :  { %v983_v48 = vpack.c.bf16 %v424_v46, %v423_v43 }
 0x15e   :  { %v337_v50 = vpop.f32.mrb[36].mxu0 }
 0x15f   :  { %v435_v51 = vmul.f32 %v337_v50, %v277_v10  ;;  %v920_v52 = vpop.f32.mrb[37].mxu0  ;;  %984 = vmatpush1.bf16.msra.mxu1 %v983_v48 }
 0x160   :  { %985 = vmatprep.subr.bf16.mxu1 %v1024_v0 }
 0x162   :  { %v342_v54 = vpop.f32.mrb[38].mxu0 }
 0x163   :  { %v436_v55 = vmul.f32 %v342_v54, %v282_v12  ;;  %v923_v56 = vpop.f32.mrb[39].mxu0 }
 0x165   :  { %v986_v57 = vpack.c.bf16 %v436_v55, %v435_v51 }
 0x166   :  { %v347_v59 = vpop.f32.mrb[40].mxu0 }
 0x167   :  { %v351_v60 = vmax.f32 %v347_v59, 0.0  ;;  %v926_v61 = vpop.f32.mrb[41].mxu0  ;;  %987 = vmatpush1.bf16.msra.mxu1 %v986_v57  ;;  %v501_v57 = vpop.permute.xlu0 %500 }
 0x168   :  { %988 = vmatprep.subr.bf16.mxu1 %v1024_v0 }
 0x169   :  { %v361_v62 = vrot.slane %v351_v60, %v1337_v58 }
 0x16b   :  { %v362_v1 = vmul.f32 %v361_v62, %v356_v63 }
 0x16d   :  { %v364_v2 = vmax.f32 %v362_v1, 0.0 }
 0x16f   :  { %v370_v3 = vrot.slane %v364_v2, 1  ;;  %v385_v4 = vrot.slane %v364_v2, 2  ;;  %v400_v5 = vrot.slane %v364_v2, 3 }
 0x171   :  { %v372_v8 = vmul.f32 %v370_v3, %v364_v2  ;;  %v387_v9 = vmul.f32 %v385_v4, %v364_v2  ;;  %v402_v10 = vmul.f32 %v400_v5, %v364_v2  ;;  %v605_v2 = vld [vmem:[%s1398_s5 + $0x8] sm:$0xff]  ;;  %v616_v3 = vpop.permute.xlu0 %615 }
 0x173   :  { %v376_v11 = vrot.slane %v372_v8, %v1337_v58  ;;  %v391_v12 = vrot.slane %v387_v9, %v1337_v58  ;;  %v406_v13 = vrot.slane %v402_v10, %v1337_v58  ;;  %v418_v14 = vrot.slane %v372_v8, %v417_v6 }
 0x174   :  { %v430_v16 = vrot.slane %v387_v9, %v417_v6  ;;  %v442_v17 = vrot.slane %v372_v8, %v441_v7 }
 0x175   :  { %v377_v19 = vmul.f32 %v376_v11, %v1317_v15  ;;  %v378_v20 = vmul.f32 %v376_v11, %v1319_v18  ;;  %v392_v21 = vmul.f32 %v391_v12, %v1323_v22  ;;  %v393_v23 = vmul.f32 %v391_v12, %v1326_v25  ;;  %v447_v22 = vld [vmem:[%s1396_s3] sm:$0xff]  ;;  %v450_v25 = vld [vmem:[%s1396_s3 + $0x18] sm:$0xff]  ;;  %v712_v10 = vpop.permute.xlu0 %711 }
 0x176   :  { %v407_v24 = vmul.f32 %v406_v13, %v1330_v29  ;;  %v408_v26 = vmul.f32 %v406_v13, %v397_v32  ;;  %v419_v27 = vmul.f32 %v418_v14, %v411_v36  ;;  %v420_v28 = vmul.f32 %v418_v14, %v412_v39  ;;  %v449_v29 = vld [vmem:[%s1396_s3 + $0x10] sm:$0xff]  ;;  %v451_v32 = vld [vmem:[%s1396_s3 + $0x20] sm:$0xff]  ;;  %v454_v36 = vld [vmem:[%s1396_s3 + $0x38] sm:$0xff] }
 0x177   :  { %v989_v30 = vpack.c.bf16 %v378_v20, %v377_v19  ;;  %v992_v31 = vpack.c.bf16 %v393_v23, %v392_v21  ;;  %v431_v33 = vmul.f32 %v430_v16, %v423_v43  ;;  %v432_v34 = vmul.f32 %v430_v16, %v424_v46  ;;  %v453_v39 = vld [vmem:[%s1396_s3 + $0x30] sm:$0xff]  ;;  %v491_v46 = vpop.permute.xlu1 %490 }
 0x178   :  { %v995_v35 = vpack.c.bf16 %v408_v26, %v407_v24  ;;  %v998_v37 = vpack.c.bf16 %v420_v28, %v419_v27  ;;  %v443_v38 = vmul.f32 %v442_v17, %v435_v51  ;;  %v444_v40 = vmul.f32 %v442_v17, %v436_v55 }
 0x179   :  { %990 = vmatpush1.bf16.msra.mxu1 %v989_v30  ;;  %v1001_v15 = vpack.c.bf16 %v432_v34, %v431_v33 }
 0x17a   :  { %991 = vmatprep.subr.bf16.mxu1 %v1024_v0  ;;  %v1004_v18 = vpack.c.bf16 %v444_v40, %v443_v38 }
 0x17b   :  { %v496_v55 = vpop.permute.xlu1 %495 }
 0x17d   :  { %993 = vmatpush1.bf16.msra.mxu1 %v992_v31 }
 0x17e   :  { %994 = vmatprep.subr.bf16.mxu1 %v1024_v0 }
 0x17f   :  { %v611_v4 = vpop.permute.xlu1 %610 }
 0x181   :  { %996 = vmatpush1.bf16.msra.mxu1 %v995_v35 }
 0x182   :  { %997 = vmatprep.subr.bf16.mxu1 %v1024_v0 }
 0x183   :  { %v707_v12 = vpop.permute.xlu1 %706 }
 0x185   :  { %999 = vmatpush1.bf16.msra.mxu1 %v998_v37 }
 0x186   :  { %1000 = vmatprep.subr.bf16.mxu1 %v1024_v0 }
 0x187   :  { %v727_v23 = vpop.permute.xlu1 %726 }
 0x188   :  { %v732_v26 = vrot.slane %v727_v23, %v1337_v58 }
 0x189   :  { %1002 = vmatpush1.bf16.msra.mxu1 %v1001_v15 }
 0x18a   :  { %1003 = vmatprep.subr.bf16.mxu1 %v1024_v0  ;;  %v452_v0 = vld [vmem:[%s1396_s3 + $0x28] sm:$0xff] }
 0x18d   :  { %1005 = vmatpush1.bf16.msra.mxu1 %v1004_v18 }
 0x190   :  { %580 = vmatmul.mubr.f32.vlgmr.msra.gmra.mrb[0].mxu1 %v447_v22 }
 0x191   :  { %783 = vmatprep.mubr.msk.f32.mxu1 %vm71_vm0, %v450_v25 }
 0x194   :  { %585 = vmatmul.mubr.f32.gmra.mrb[2].mxu1 %v449_v29 }
 0x195   :  { %784 = vmatprep.mubr.msk.f32.mxu1 %vm71_vm0, %v452_v0 }
 0x198   :  { %590 = vmatmul.mubr.f32.gmra.mrb[4].mxu1 %v451_v32 }
 0x199   :  { %785 = vmatprep.mubr.msk.f32.mxu1 %vm71_vm0, %v454_v36 }
 0x19c   :  { %595 = vmatmul.mubr.f32.gmra.mrb[6].mxu1 %v453_v39 }
 0x19d   :  { %935 = vmatprep.mubr.msk.f32.mxu1 %vm618_vm3, %v604_v41 }
 0x263   :  { %v581_v42 = vpop.f32.mrb[0].mxu1 }
 0x264   :  { %v583_v43 = vpop.f32.mrb[1].mxu1  ;;  %v582_v45 = vadd.f32 %v581_v42, %v486_v44 }
 0x266   :  { %v600_v50 = vmax.f32 %v582_v45, 0.0 }
 0x267   :  { %v586_v47 = vpop.f32.mrb[2].mxu1 }
 0x268   :  { %v587_v48 = vadd.f32 %v586_v47, %v491_v46  ;;  %v588_v49 = vpop.f32.mrb[3].mxu1 }
 0x26a   :  { %v601_v51 = vmax.f32 %v587_v48, 0.0 }
 0x26b   :  { %v591_v52 = vpop.f32.mrb[4].mxu1 }
 0x26c   :  { %v1006_v53 = vpack.c.bf16 %v601_v51, %v600_v50  ;;  %v593_v54 = vpop.f32.mrb[5].mxu1  ;;  %v592_v56 = vadd.f32 %v591_v52, %v496_v55 }
 0x26e   :  { %1007 = vmatprep.subr.bf16.mxu1 %v1006_v53  ;;  %v602_v62 = vmax.f32 %v592_v56, 0.0 }
 0x26f   :  { %v596_v59 = vpop.f32.mrb[6].mxu1  ;;  %1009 = vmatpush3.bf16.msra.mxu1 %v1006_v53 }
 0x270   :  { %v597_v60 = vadd.f32 %v596_v59, %v501_v57  ;;  %v598_v61 = vpop.f32.mrb[7].mxu1 }
 0x272   :  { %v603_v63 = vmax.f32 %v597_v60, 0.0 }
 0x274   :  { %v1010_v1 = vpack.c.bf16 %v603_v63, %v602_v62 }
 0x276   :  { %1011 = vmatprep.subr.bf16.mxu1 %v1010_v1 }
 0x277   :  { %1013 = vmatpush3.bf16.msra.mxu1 %v1010_v1 }
 0x27a   :  { %936 = vmatmul.mubr.msk.f32.vlgmr.msra.gmra.mrb[8].mxu1 %vm618_vm3, %v605_v2 }
 0x34d   :  { %v937_v5 = vpop.f32.mrb[8].mxu1 }
 0x34e   :  { %v697_v6 = vadd.f32 %v937_v5, %v616_v3  ;;  %v691_v7 = vpop.f32.mrb[9].mxu1 }
 0x34f   :  { %v692_v8 = vadd.f32 %v691_v7, %v611_v4 }
 0x350   :  { %v701_v9 = vmax.f32 %v697_v6, 0.0 }
 0x351   :  { %v700_v11 = vmax.f32 %v692_v8, 0.0 }
 0x352   :  { %v715_v13 = vmul.f32 %v712_v10, %v701_v9 }
 0x353   :  { %v714_v14 = vmul.f32 %v707_v12, %v700_v11 }
 0x355   :  { %v716_v16 = vadd.f32 %v715_v13, %v714_v14 }
 0x357   :  { %v717_v17 = vrot.slane %v716_v16, 4 }
 0x359   :  { %v718_v19 = vadd.f32 %v717_v17, %v716_v16 }
 0x35b   :  { %v719_v20 = vrot.slane %v718_v19, 2 }
 0x35d   :  { %v720_v21 = vadd.f32 %v719_v20, %v718_v19 }
 0x35f   :  { %v721_v24 = vrot.slane %v720_v21, 1 }
 0x361   :  { %v722_v27 = vadd.f32 %v721_v24, %v720_v21 }
 0x363   :  { %v733_v28 = vadd.f32 %v732_v26, %v722_v27 }
 0x365   :  { %v788_v30 = vmul.f32 -1.442695, %v733_v28 }
 0x367   :  { %1020 = vpow2.f32 %v788_v30 }
 0x371   :  { %v1021_v31 = vpop.eup %1020 }
 0x372   :  { %v737_v33 = vadd.f32 1.0, %v1021_v31 }
 0x374   :  { %1022 = vrcp.f32 %v737_v33 }
 0x37e   :  { %v1023_v34 = vpop.eup %1022 }
 0x37f   :  { %740 = vst [vmem:[%s1399_s9] sm:$0x1] %v1023_v34 }

</bundles_post_ra>
